<compile_context>
chip_gen: v7x
topology: tpu7x:2x2x1
jax: 0.10.0
libtpu: 0.0.40
codegen_flags: <defaults>
</compile_context>

<pallas_src>
import functools
import math

import jax
import jax.numpy as jnp
from jax import lax
from jax.experimental import pallas as pl
from jax.experimental.pallas import tpu as pltpu


def _round_up(x, m):
    return ((x + m - 1) // m) * m


def _tpu_generation():
    """Coarse chip-generation detection from the device kind string."""
    try:
        kind = jax.devices()[0].device_kind.lower()
    except Exception:
        return "unknown"
    if "v5" in kind and ("lite" in kind or "5e" in kind):
        return "v5e"
    if "v6" in kind:
        return "v6e"
    if "7" in kind:
        return "v7x"
    return "unknown"


def _vmem_limit_bytes(gen):
    """Scoped-VMEM limit with headroom for Mosaic internal scratch."""
    try:
        cap = int(pltpu.get_tpu_info().vmem_capacity_bytes)
    except Exception:
        # v7x has 64 MiB per TensorCore; v5e/v6e (and unknown) have 128 MiB.
        cap = (64 << 20) if gen == "v7x" else (128 << 20)
    if cap <= (64 << 20):
        # v7x: leave ~14 MiB for compiler-internal scratch -> ~50 MiB usable.
        return max(32 << 20, cap - (14 << 20))
    # v5e / v6e: cap scoped VMEM at ~100 MiB.
    return min(cap - (16 << 20), 100 << 20)


@functools.lru_cache(maxsize=1)
def _buffered_supported():
    """One-time probe: can this JAX build lower pipeline_mode=pl.Buffered(1)?"""
    if not hasattr(pl, "Buffered"):
        return False
    try:
        spec = pl.BlockSpec((8, 128), lambda i: (0, 0), pipeline_mode=pl.Buffered(1))
    except TypeError:
        return False

    def _k(a_ref, o_ref):
        o_ref[...] = a_ref[...] + 1.0

    try:
        fn = pl.pallas_call(
            _k,
            out_shape=jax.ShapeDtypeStruct((8, 128), jnp.float32),
            grid_spec=pltpu.PrefetchScalarGridSpec(
                num_scalar_prefetch=0,
                grid=(1,),
                in_specs=[spec],
                out_specs=pl.BlockSpec((8, 128), lambda i: (0, 0)),
            ),
        )
        jax.jit(fn).lower(jax.ShapeDtypeStruct((8, 128), jnp.float32)).compile()
        return True
    except Exception:
        return False


_TM_CANDIDATES = (1024, 512, 256, 128, 64, 32, 16, 8)


def _choose_tm(M, in_p, mid_p, x_itemsize, w_itemsize, budget_bytes, gen,
               single_buffer_weights):
    """Largest row tile whose I/O + weights + f32 temporaries fit the VMEM budget."""
    wfac = 1 if single_buffer_weights else 2
    w_bytes = wfac * (2 * in_p * mid_p * w_itemsize + (in_p + mid_p) * 4)
    m_cap = max(8, _round_up(M, 8))
    tm_sel = 8
    for tm in _TM_CANDIDATES:
        if tm > m_cap:
            continue
        io_bytes = 2 * 2 * tm * in_p * x_itemsize            # x + out tiles, double-buffered
        f32_tmp = 2 * tm * in_p * 4 + 2 * tm * mid_p * 4     # (x_f32, u) + (h, g)
        if w_bytes + io_bytes + f32_tmp <= budget_bytes:
            tm_sel = tm
            break
    if gen == "v7x" and M >= 512:
        # v7x has 2 TensorCores sharded over the "parallel" grid axis: prefer an
        # even step count (>= 2) so neither core idles; keep tm >= 256 (MXU is
        # 2x256^2, and smaller tiles only add per-step overhead).
        while tm_sel > 256:
            steps = pl.cdiv(M, tm_sel)
            if steps >= 2 and steps % 2 == 0:
                break
            tm_sel //= 2
    return tm_sel


def adapter_kernel(x_ref, wd_ref, bd_ref, wu_ref, bu_ref, o_ref):
    # x_ref:  (tm, in_p)      row tile of the (possibly lane-padded) input
    # wd_ref: (in_p, mid_p)   down-projection weight (pre-transposed, zero-padded)
    # bd_ref: (1, mid_p)      f32 bias
    # wu_ref: (mid_p, in_p)   up-projection weight (pre-transposed, zero-padded)
    # bu_ref: (1, in_p)       f32 bias
    # o_ref:  (tm, in_p)
    x = x_ref[...]

    # down-projection on the MXU, f32 accumulation
    h = jnp.dot(x, wd_ref[...], preferred_element_type=jnp.float32)
    h = h + bd_ref[...].astype(jnp.float32)

    # exact erf GELU (matches torch.nn.GELU default), kept in f32
    g = 0.5 * h * (1.0 + lax.erf(h * (1.0 / math.sqrt(2.0))))

    # up-projection (operands in the weight dtype, f32 accumulation)
    u = jnp.dot(g.astype(wu_ref.dtype), wu_ref[...],
                preferred_element_type=jnp.float32)
    u = u + bu_ref[...].astype(jnp.float32)

    # residual add in f32, store in the output dtype
    o_ref[...] = (x.astype(jnp.float32) + u).astype(o_ref.dtype)


def pack_adapter_params(w_down, b_down, w_up, b_up, *, weight_dtype=None):
    """Pre-transpose + lane-pad the adapter parameters ONCE (outside the hot forward).

    w_down: [mid_dim, in_dim] (torch nn.Linear layout);  w_up: [in_dim, mid_dim].
    Returns (wd_t, bd, wu_t, bu) with feature dims zero-padded to multiples of 128.
    Zero padding is exact: padded K rows contribute 0 to the contraction, padded
    hidden columns stay 0 through GELU, padded output columns are 0 and get sliced
    off in the wrapper (only when in_dim is not already a multiple of 128).
    """
    mid_dim, in_dim = w_down.shape
    in_p = _round_up(in_dim, 128)
    mid_p = _round_up(mid_dim, 128)
    wdtype = weight_dtype if weight_dtype is not None else w_down.dtype

    wd_t = jnp.pad(jnp.transpose(w_down), ((0, in_p - in_dim), (0, mid_p - mid_dim)))
    wu_t = jnp.pad(jnp.transpose(w_up), ((0, mid_p - mid_dim), (0, in_p - in_dim)))
    bd = jnp.pad(b_down.astype(jnp.float32), (0, mid_p - mid_dim)).reshape(1, mid_p)
    bu = jnp.pad(b_up.astype(jnp.float32), (0, in_p - in_dim)).reshape(1, in_p)
    return wd_t.astype(wdtype), bd, wu_t.astype(wdtype), bu


@functools.partial(jax.jit,
                   static_argnames=("tm", "vmem_limit", "use_buffered", "alias_x"))
def _adapter_forward_2d(x2d, wd_t, bd, wu_t, bu, *, tm, vmem_limit, use_buffered,
                        alias_x):
    M, in_dim = x2d.shape
    in_p, mid_p = wd_t.shape

    # Hot path (in_dim already a multiple of 128, M >= 8): no padding, no copies.
    m_eff = M
    x_in = x2d
    padded = (in_dim != in_p) or (M < 8)
    if padded:
        m_eff = max(M, 8)
        x_in = jnp.pad(x2d, ((0, m_eff - M), (0, in_p - in_dim)))

    wkw = dict(pipeline_mode=pl.Buffered(1)) if use_buffered else {}
    grid = (pl.cdiv(m_eff, tm),)   # partial last block is masked by Pallas

    out = pl.pallas_call(
        adapter_kernel,
        out_shape=jax.ShapeDtypeStruct((m_eff, in_p), x2d.dtype),
        grid_spec=pltpu.PrefetchScalarGridSpec(
            num_scalar_prefetch=0,
            grid=grid,
            in_specs=[
                pl.BlockSpec((tm, in_p), lambda i: (i, 0)),
                pl.BlockSpec((in_p, mid_p), lambda i: (0, 0), **wkw),
                pl.BlockSpec((1, mid_p), lambda i: (0, 0), **wkw),
                pl.BlockSpec((mid_p, in_p), lambda i: (0, 0), **wkw),
                pl.BlockSpec((1, in_p), lambda i: (0, 0), **wkw),
            ],
            out_specs=pl.BlockSpec((tm, in_p), lambda i: (i, 0)),
        ),
        compiler_params=pltpu.CompilerParams(
            dimension_semantics=("parallel",),
            vmem_limit_bytes=int(vmem_limit),
        ),
        input_output_aliases=({0: 0} if alias_x else {}),
    )(x_in, wd_t, bd, wu_t, bu)

    if padded:
        out = out[:M, :in_dim]
    return out


def adapter_forward(x, packed_params, *, tm=None, donate_x=False):
    """x: [..., in_dim]; packed_params from pack_adapter_params. Returns x.dtype."""
    wd_t, bd, wu_t, bu = packed_params
    in_p, mid_p = wd_t.shape
    in_dim = x.shape[-1]
    assert in_dim <= in_p

    orig_shape = x.shape
    x2d = x.reshape(-1, in_dim)
    M = x2d.shape[0]

    gen = _tpu_generation()
    vmem_limit = _vmem_limit_bytes(gen)
    use_buffered = _buffered_supported()
    if tm is None:
        tm = _choose_tm(M, in_p, mid_p, x2d.dtype.itemsize, wd_t.dtype.itemsize,
                        int(vmem_limit * 0.85), gen, use_buffered)

    # In-place residual write only when no padding path is taken (caller opts in).
    alias_x = bool(donate_x and in_dim == in_p and M >= 8)

    out2d = _adapter_forward_2d(
        x2d, wd_t, bd, wu_t, bu,
        tm=int(tm), vmem_limit=int(vmem_limit),
        use_buffered=bool(use_buffered), alias_x=alias_x)
    return out2d.reshape(orig_shape)


def reference_forward(x, w_down, b_down, w_up, b_up):
    h = jnp.einsum("...i,mi->...m", x, w_down) + b_down
    h = 0.5 * h * (1.0 + lax.erf(h / math.sqrt(2.0)))
    u = jnp.einsum("...m,im->...i", h, w_up) + b_up
    return x + u


if __name__ == "__main__":
    # Small shapes consistent with the module: x is [batch, seq, in_dim]
    batch, seq, in_dim, mid_dim = 2, 8, 32, 16

    key = jax.random.PRNGKey(0)
    kx, kwd, kbd, kwu, kbu = jax.random.split(key, 5)

    x = jax.random.normal(kx, (batch, seq, in_dim), dtype=jnp.float32)

    # Deterministic synthetic parameters (torch nn.Linear layout: [out, in]).
    w_down = jax.random.normal(kwd, (mid_dim, in_dim), dtype=jnp.float32) * 0.1
    b_down = jax.random.normal(kbd, (mid_dim,), dtype=jnp.float32) * 0.1
    w_up = jax.random.normal(kwu, (in_dim, mid_dim), dtype=jnp.float32) * 0.1
    b_up = jax.random.normal(kbu, (in_dim,), dtype=jnp.float32) * 0.1

    ref = reference_forward(x, w_down, b_down, w_up, b_up)

    # f32 path: matches the torch reference (erf GELU, f32 accumulation).
    packed_f32 = pack_adapter_params(w_down, b_down, w_up, b_up)
    out = jax.block_until_ready(adapter_forward(x, packed_f32))
    assert out.shape == x.shape
    assert jnp.allclose(out, ref, atol=1e-5, rtol=1e-5), "f32 mismatch vs reference"

    # bf16-operand path (production setting on v6e/v7x: halves HBM/VMEM bytes moved;
    # matmuls still accumulate in f32, GELU stays in f32). NOTE: the residual x is
    # bf16 here, so tolerance reflects expected rounding, not a bug.
    packed_bf16 = pack_adapter_params(w_down, b_down, w_up, b_up,
                                      weight_dtype=jnp.bfloat16)
    out_bf16 = jax.block_until_ready(
        adapter_forward(x.astype(jnp.bfloat16), packed_bf16))
    assert out_bf16.shape == x.shape
    assert jnp.allclose(out_bf16.astype(jnp.float32), ref, atol=5e-2, rtol=5e-2), \
        "bf16 mismatch vs reference"

    print("KERNEL_OK")
</pallas_src>

<mosaic_0001>
module attributes {stable_mosaic.version = 11 : i64} {
  func.func @adapter_kernel(%arg0: i32, %arg1: memref<16x128xf32, #tpu.memory_space<vmem>>, %arg2: memref<128x128xf32, #tpu.memory_space<vmem>>, %arg3: memref<1x128xf32, #tpu.memory_space<vmem>>, %arg4: memref<128x128xf32, #tpu.memory_space<vmem>>, %arg5: memref<1x128xf32, #tpu.memory_space<vmem>>, %arg6: memref<16x128xf32, #tpu.memory_space<vmem>>) attributes {dimension_semantics = [#tpu.dimension_semantics<parallel>], iteration_bounds = array<i64: 1>, scalar_prefetch = 0 : i64, scratch_operands = 0 : i64, tpu.core_type = #tpu.core_type<tc>, window_params = [{transform_indices = @transform_0, window_bounds = array<i64: 16, 128>}, {pipeline_mode = #tpu.pipeline_mode<synchronous>, transform_indices = @transform_1, window_bounds = array<i64: 128, 128>}, {pipeline_mode = #tpu.pipeline_mode<synchronous>, transform_indices = @transform_2, window_bounds = array<i64: 1, 128>}, {pipeline_mode = #tpu.pipeline_mode<synchronous>, transform_indices = @transform_3, window_bounds = array<i64: 128, 128>}, {pipeline_mode = #tpu.pipeline_mode<synchronous>, transform_indices = @transform_4, window_bounds = array<i64: 1, 128>}, {transform_indices = @transform_5, window_bounds = array<i64: 16, 128>}]} {
    %c0 = arith.constant 0 : index
    %c0_0 = arith.constant 0 : index
    %0 = vector.load %arg1[%c0, %c0_0] : memref<16x128xf32, #tpu.memory_space<vmem>>, vector<16x128xf32>
    %c0_1 = arith.constant 0 : index
    %c0_2 = arith.constant 0 : index
    %1 = vector.load %arg2[%c0_1, %c0_2] : memref<128x128xf32, #tpu.memory_space<vmem>>, vector<128x128xf32>
    %cst = arith.constant dense<0.000000e+00> : vector<16x128xf32>
    %2 = tpu.matmul %0, %1, %cst {dimension_numbers = #tpu.dot_dimension_numbers<[1], [0], [0], [1], [0, 0, 1, 1], [], []>} : vector<16x128xf32>, vector<128x128xf32>, vector<16x128xf32> -> vector<16x128xf32>
    %c0_3 = arith.constant 0 : index
    %c0_4 = arith.constant 0 : index
    %3 = vector.load %arg3[%c0_3, %c0_4] : memref<1x128xf32, #tpu.memory_space<vmem>>, vector<1x128xf32>
    %4 = vector.broadcast %3 : vector<1x128xf32> to vector<16x128xf32>
    %5 = arith.addf %2, %4 : vector<16x128xf32>
    %cst_5 = arith.constant 5.000000e-01 : f32
    %6 = vector.broadcast %cst_5 : f32 to vector<16x128xf32>
    %7 = arith.mulf %6, %5 : vector<16x128xf32>
    %cst_6 = arith.constant 0.707106769 : f32
    %8 = vector.broadcast %cst_6 : f32 to vector<16x128xf32>
    %9 = arith.mulf %5, %8 : vector<16x128xf32>
    %10 = math.erf %9 : vector<16x128xf32>
    %cst_7 = arith.constant 1.000000e+00 : f32
    %11 = vector.broadcast %cst_7 : f32 to vector<16x128xf32>
    %12 = arith.addf %11, %10 : vector<16x128xf32>
    %13 = arith.mulf %7, %12 : vector<16x128xf32>
    %c0_8 = arith.constant 0 : index
    %c0_9 = arith.constant 0 : index
    %14 = vector.load %arg4[%c0_8, %c0_9] : memref<128x128xf32, #tpu.memory_space<vmem>>, vector<128x128xf32>
    %cst_10 = arith.constant dense<0.000000e+00> : vector<16x128xf32>
    %15 = tpu.matmul %13, %14, %cst_10 {dimension_numbers = #tpu.dot_dimension_numbers<[1], [0], [0], [1], [0, 0, 1, 1], [], []>} : vector<16x128xf32>, vector<128x128xf32>, vector<16x128xf32> -> vector<16x128xf32>
    %c0_11 = arith.constant 0 : index
    %c0_12 = arith.constant 0 : index
    %16 = vector.load %arg5[%c0_11, %c0_12] : memref<1x128xf32, #tpu.memory_space<vmem>>, vector<1x128xf32>
    %17 = vector.broadcast %16 : vector<1x128xf32> to vector<16x128xf32>
    %18 = arith.addf %15, %17 : vector<16x128xf32>
    %19 = arith.addf %0, %18 : vector<16x128xf32>
    %c0_13 = arith.constant 0 : index
    %c0_14 = arith.constant 0 : index
    %20 = vector.load %arg6[%c0_13, %c0_14] : memref<16x128xf32, #tpu.memory_space<vmem>>, vector<16x128xf32>
    tpu.vector_store %arg6[%c0_13, %c0_14], %19 {strides = array<i32>} : memref<16x128xf32, #tpu.memory_space<vmem>>, vector<16x128xf32>,
    return
  }
  func.func @transform_0(%arg0: i32) -> (i32, i32) {
    %c0_i32 = arith.constant 0 : i32
    %c0_i32_0 = arith.constant 0 : i32
    return %arg0, %c0_i32 : i32, i32
  }
  func.func @transform_1(%arg0: i32) -> (i32, i32) {
    %c0_i32 = arith.constant 0 : i32
    %c0_i32_0 = arith.constant 0 : i32
    %c0_i32_1 = arith.constant 0 : i32
    return %c0_i32, %c0_i32_0 : i32, i32
  }
  func.func @transform_2(%arg0: i32) -> (i32, i32) {
    %c0_i32 = arith.constant 0 : i32
    %c0_i32_0 = arith.constant 0 : i32
    %c0_i32_1 = arith.constant 0 : i32
    return %c0_i32, %c0_i32_0 : i32, i32
  }
  func.func @transform_3(%arg0: i32) -> (i32, i32) {
    %c0_i32 = arith.constant 0 : i32
    %c0_i32_0 = arith.constant 0 : i32
    %c0_i32_1 = arith.constant 0 : i32
    return %c0_i32, %c0_i32_0 : i32, i32
  }
  func.func @transform_4(%arg0: i32) -> (i32, i32) {
    %c0_i32 = arith.constant 0 : i32
    %c0_i32_0 = arith.constant 0 : i32
    %c0_i32_1 = arith.constant 0 : i32
    return %c0_i32, %c0_i32_0 : i32, i32
  }
  func.func @transform_5(%arg0: i32) -> (i32, i32) {
    %c0_i32 = arith.constant 0 : i32
    %c0_i32_0 = arith.constant 0 : i32
    return %arg0, %c0_i32 : i32, i32
  }
}

</mosaic_0001>

<bundles_post_ra>
// kernel: _adapter_forward_2d.1
= control target key start
LH: loop header
LB: loop body
LE: loop exit
PB: predicated region body
PF: predicated region fallthrough
CT: control target
= control target key end

     0   :  { %10 = vsyncpa [#allocation3], 0  ;;  %s773_s0 = inlined_call_operand.hbm [shape: f32[16,128], index: 0, kind: input, shape index: {}]   ;;  %s774_s1 = inlined_call_operand.hbm [shape: f32[128,128], index: 1, kind: input, shape index: {}]   ;;  %s775_s2 = inlined_call_operand.hbm [shape: f32[1,128], index: 2, kind: input, shape index: {}]   ;;  %s776_s3 = inlined_call_operand.hbm [shape: f32[128,128], index: 3, kind: input, shape index: {}]   ;;  %s777_s4 = inlined_call_operand.hbm [shape: f32[1,128], index: 4, kind: input, shape index: {}]   ;;  %s778_s5 = inlined_call_operand.hbm [shape: f32[16,128], index: 5, kind: output, shape index: {}]  }
   0x1   :  { %11 = vsyncpa [#allocation6], 0 }
   0x2   :  { %12 = vsyncpa [#allocation9], 0 }
   0x3   :  { %13 = vsyncpa [#allocation4], 0  ;;  %s640_s18 = smov [#allocation5]   ;;  %s641_s20 = smov [#allocation8]  }
   0x4   :  { %s31_s19 = sshll.u32 %s640_s18, 4  ;;  %s53_s21 = sshll.u32 %s641_s20, 4  ;;  %s32_s19 = int_to_ptr.vmem [resolvable:$true] %s31_s19  ;;  %s678_s21 = int_to_ptr.vmem [resolvable:$true] %s53_s21 }
   0x5   :  { %s500_s24 = scalar_lea.hbm %s774_s1, 2048 }
   0x6   :  { %p501_p0 = scmp.ne.s32.totalorder %s774_s1, %s500_s24  ;;  %p504_p1 = scmp.lt.u32.totalorder %s500_s24, %s774_s1 }
   0x8   :  { %p506_p2 = pnand %p504_p1, %p501_p0 }
   0xa   :  { %509 = shalt.err (!%p506_p2)
}
   0xb   :  { %s510_s29 = scalar_lea.vmem %s32_s19, 2048  ;;  %p515_p4 = scmp.lt.s32.totalorder %s32_s19, %s32_s19 }
   0xc   :  { %p511_p3 = scmp.ne.s32.totalorder %s32_s19, %s510_s29  ;;  %p516_p5 = scmp.lt.s32.totalorder %s510_s29, %s510_s29 }
   0xe   :  { %p517_p6 = por %p516_p5, %p515_p4 }
  0x10   :  { %p518_p7 = pnand %p517_p6, %p511_p3 }
  0x12   :  { %521 = shalt.err (!%p518_p7)
}
  0x13   :  { %s642_s30 = smov 128   ;;  %s643_s6 = smov 8  }
  0x14   :  { %37 = dma.hbm_to_vmem [thread:$0]  %s774_s1, 2048, %s32_s19, [#allocation6], %s642_s30, %s642_s30, %s643_s6  }
  0x15   :  { %s522_s11 = scalar_lea.hbm %s776_s3, 2048 }
  0x16   :  { %p523_p8 = scmp.ne.s32.totalorder %s776_s3, %s522_s11  ;;  %p526_p9 = scmp.lt.u32.totalorder %s522_s11, %s776_s3 }
  0x18   :  { %p528_p10 = pnand %p526_p9, %p523_p8 }
  0x1a   :  { %531 = shalt.err (!%p528_p10)
}
  0x1b   :  { %s532_s16 = scalar_lea.vmem %s678_s21, 2048  ;;  %p537_p12 = scmp.lt.s32.totalorder %s678_s21, %s678_s21 }
  0x1c   :  { %p533_p11 = scmp.ne.s32.totalorder %s678_s21, %s532_s16  ;;  %p538_p13 = scmp.lt.s32.totalorder %s532_s16, %s532_s16 }
  0x1e   :  { %p539_p0 = por %p538_p13, %p537_p12 }
  0x20   :  { %p540_p1 = pnand %p539_p0, %p533_p11 }
  0x22   :  { %543 = shalt.err (!%p540_p1)
}
  0x23   :  { %59 = dma.hbm_to_vmem [thread:$0]  %s776_s3, 2048, %s678_s21, [#allocation9], %s642_s30, %s642_s30, %s643_s6  }
  0x24   :  { %s644_s18 = smov [#allocation2]   ;;  %s645_s20 = smov [#allocation7]  }
  0x25   :  { %s19_s19 = sshll.u32 %s644_s18, 4  ;;  %s44_s22 = sshll.u32 %s645_s20, 4  ;;  %s20_s19 = int_to_ptr.vmem [resolvable:$true] %s19_s19  ;;  %s45_s22 = int_to_ptr.vmem [resolvable:$true] %s44_s22 }
  0x26   :  { %s544_s25 = scalar_lea.hbm %s773_s0, 256 }
  0x27   :  { %p545_p2 = scmp.ne.s32.totalorder %s773_s0, %s544_s25  ;;  %p548_p3 = scmp.lt.u32.totalorder %s544_s25, %s773_s0 }
  0x29   :  { %p550_p4 = pnand %p548_p3, %p545_p2 }
  0x2b   :  { %553 = shalt.err (!%p550_p4)
}
  0x2c   :  { %s554_s3 = scalar_lea.vmem %s20_s19, 256  ;;  %p559_p6 = scmp.lt.s32.totalorder %s20_s19, %s20_s19 }
  0x2d   :  { %p555_p5 = scmp.ne.s32.totalorder %s20_s19, %s554_s3  ;;  %p560_p7 = scmp.lt.s32.totalorder %s554_s3, %s554_s3 }
  0x2f   :  { %p561_p8 = por %p560_p7, %p559_p6 }
  0x31   :  { %p562_p9 = pnand %p561_p8, %p555_p5 }
  0x33   :  { %565 = shalt.err (!%p562_p9)
}
  0x34   :  { %25 = dma.hbm_to_vmem [thread:$0]  %s773_s0, 256, %s20_s19, [#allocation3], %s642_s30, %s642_s30, %s643_s6  }
  0x35   :  { %s566_s10 = scalar_lea.hbm %s775_s2, 16 }
  0x36   :  { %p567_p10 = scmp.ne.s32.totalorder %s775_s2, %s566_s10  ;;  %p570_p11 = scmp.lt.u32.totalorder %s566_s10, %s775_s2 }
  0x38   :  { %p572_p12 = pnand %p570_p11, %p567_p10 }
  0x3a   :  { %575 = shalt.err (!%p572_p12)
}
  0x3b   :  { %s576_s15 = scalar_lea.vmem %s45_s22, 16  ;;  %s580_s16 = scalar_lea.vmem %s45_s22, 32 }
  0x3c   :  { %p577_p13 = scmp.ne.s32.totalorder %s45_s22, %s576_s15  ;;  %p581_p0 = scmp.lt.s32.totalorder %s45_s22, %s45_s22 }
  0x3d   :  { %p582_p1 = scmp.lt.s32.totalorder %s580_s16, %s576_s15 }
  0x3f   :  { %p583_p2 = por %p582_p1, %p581_p0 }
  0x41   :  { %p584_p3 = pnand %p583_p2, %p577_p13 }
  0x43   :  { %587 = shalt.err (!%p584_p3)
}
  0x44   :  { %47 = dma.hbm_to_vmem [thread:$0]  %s775_s2, 16, %s45_s22, [#allocation6]  }
  0x45   :  { %s646_s17 = smov [#allocation10]   ;;  %s588_s23 = scalar_lea.hbm %s777_s4, 16 }
  0x46   :  { %s66_s18 = sshll.u32 %s646_s17, 4  ;;  %p589_p4 = scmp.ne.s32.totalorder %s777_s4, %s588_s23  ;;  %s67_s18 = int_to_ptr.vmem [resolvable:$true] %s66_s18 }
  0x47   :  { %p592_p5 = scmp.lt.u32.totalorder %s588_s23, %s777_s4 }
  0x49   :  { %p594_p6 = pnand %p592_p5, %p589_p4 }
  0x4b   :  { %597 = shalt.err (!%p594_p6)
}
  0x4c   :  { %s598_s28 = scalar_lea.vmem %s67_s18, 16  ;;  %s602_s2 = scalar_lea.vmem %s67_s18, 32 }
  0x4d   :  { %p599_p7 = scmp.ne.s32.totalorder %s67_s18, %s598_s28  ;;  %p603_p8 = scmp.lt.s32.totalorder %s67_s18, %s67_s18 }
  0x4e   :  { %p604_p9 = scmp.lt.s32.totalorder %s602_s2, %s598_s28 }
  0x50   :  { %p605_p10 = por %p604_p9, %p603_p8 }
  0x52   :  { %p606_p11 = pnand %p605_p10, %p599_p7 }
  0x54   :  { %609 = shalt.err (!%p606_p11)
}
  0x55   :  { %69 = dma.hbm_to_vmem [thread:$0]  %s777_s4, 16, %s67_s18, [#allocation9]  }
  0x56   :  { %632 = dma.done.wait [#allocation3], 256  }
  0x57   :  { %633 = vsyncadd [#allocation3], 4294967040 }
  0x58   :  { %634 = dma.done.wait [#allocation6], 2064  }
  0x59   :  { %635 = vsyncadd [#allocation6], 4294965232 }
  0x5a   :  { %636 = dma.done.wait [#allocation9], 2064  }
  0x5b   :  { %637 = vsyncadd [#allocation9], 4294965232  ;;  %v87_v0 = vld [vmem:[#allocation5] sm:$0xff]  ;;  %v88_v1 = vld [vmem:[#allocation5 + $0x8] sm:$0xff]  ;;  %s647_s4 = smov [#allocation11]  }
  0x5c   :  { %v89_v2 = vld [vmem:[#allocation5 + $0x10] sm:$0xff]  ;;  %v424_v3 = vpack.c.bf16 %v88_v1, %v87_v0  ;;  %v90_v4 = vld [vmem:[#allocation5 + $0x18] sm:$0xff]  ;;  %v91_v6 = vld [vmem:[#allocation5 + $0x20] sm:$0xff]  ;;  %s302_s3 = sshll.u32 %s647_s4, 4  ;;  %s303_s3 = int_to_ptr.vmem [resolvable:$true] %s302_s3 }
  0x5d   :  { %v428_v5 = vpack.c.bf16 %v90_v4, %v89_v2  ;;  %v92_v7 = vld [vmem:[#allocation5 + $0x28] sm:$0xff]  ;;  %v93_v9 = vld [vmem:[#allocation5 + $0x30] sm:$0xff]  ;;  %v94_v10 = vld [vmem:[#allocation5 + $0x38] sm:$0xff]  ;;  %s610_s21 = scalar_lea.vmem %s303_s3, 256  ;;  %p615_p13 = scmp.lt.s32.totalorder %s303_s3, %s303_s3 }
  0x5e   :  { %425 = vmatprep.subr.bf16.mxu0 %v424_v3  ;;  %v432_v8 = vpack.c.bf16 %v92_v7, %v91_v6  ;;  %v754_v11 = vld [vmem:[#allocation2] sm:$0xff]  ;;  %v195_v12 = vld [vmem:[#allocation8] sm:$0xff]  ;;  %v198_v16 = vld [vmem:[#allocation8 + $0x18] sm:$0xff]  ;;  %v436_v20 = vpack.c.bf16 %v94_v10, %v93_v9  ;;  %p611_p12 = scmp.ne.s32.totalorder %s303_s3, %s610_s21  ;;  %p616_p0 = scmp.lt.s32.totalorder %s610_s21, %s610_s21 }
  0x5f   :  { %427 = vmatpush3.bf16.msra.mxu0 %v424_v3  ;;  %386 = vmatprep.mubr.f32.mxu0 %v754_v11  ;;  %v196_v13 = vld [vmem:[#allocation8 + $0x8] sm:$0xff]  ;;  %v197_v14 = vld [vmem:[#allocation8 + $0x10] sm:$0xff]  ;;  %v199_v18 = vld [vmem:[#allocation8 + $0x20] sm:$0xff] }
  0x60   :  { %429 = vmatprep.subr.bf16.mxu0 %v428_v5  ;;  %v456_v15 = vpack.c.bf16 %v196_v13, %v195_v12  ;;  %v460_v17 = vpack.c.bf16 %v198_v16, %v197_v14  ;;  %v200_v19 = vld [vmem:[#allocation8 + $0x28] sm:$0xff]  ;;  %v95_v21 = vld [vmem:[#allocation5 + $0x40] sm:$0xff]  ;;  %v98_v26 = vld [vmem:[#allocation5 + $0x58] sm:$0xff]  ;;  %p617_p1 = por %p616_p0, %p615_p13 }
  0x61   :  { %v96_v22 = vld [vmem:[#allocation5 + $0x48] sm:$0xff]  ;;  %v464_v23 = vpack.c.bf16 %v200_v19, %v199_v18  ;;  %v97_v25 = vld [vmem:[#allocation5 + $0x50] sm:$0xff]  ;;  %v99_v28 = vld [vmem:[#allocation5 + $0x60] sm:$0xff] }
  0x62   :  { %457 = vmatprep.subr.bf16.mxu1 %v456_v15  ;;  %v440_v24 = vpack.c.bf16 %v96_v22, %v95_v21  ;;  %v444_v27 = vpack.c.bf16 %v98_v26, %v97_v25  ;;  %v100_v29 = vld [vmem:[#allocation5 + $0x68] sm:$0xff]  ;;  %v101_v31 = vld [vmem:[#allocation5 + $0x70] sm:$0xff]  ;;  %v102_v32 = vld [vmem:[#allocation5 + $0x78] sm:$0xff]  ;;  %p618_p2 = pnand %p617_p1, %p611_p12 }
  0x63   :  { %431 = vmatpush3.bf16.msra.mxu0 %v428_v5  ;;  %459 = vmatpush3.bf16.msra.mxu1 %v456_v15  ;;  %v448_v30 = vpack.c.bf16 %v100_v29, %v99_v28  ;;  %v452_v33 = vpack.c.bf16 %v102_v32, %v101_v31  ;;  %v86_v34 = vld [vmem:[#allocation2 + $0x8] sm:$0xff]  ;;  %v203_v38 = vld [vmem:[#allocation8 + $0x40] sm:$0xff]  ;;  %v204_v39 = vld [vmem:[#allocation8 + $0x48] sm:$0xff] }
  0x64   :  { %433 = vmatprep.subr.bf16.mxu0 %v432_v8  ;;  %461 = vmatprep.subr.bf16.mxu1 %v460_v17  ;;  %v201_v35 = vld [vmem:[#allocation8 + $0x30] sm:$0xff]  ;;  %v202_v36 = vld [vmem:[#allocation8 + $0x38] sm:$0xff]  ;;  %v472_v40 = vpack.c.bf16 %v204_v39, %v203_v38  ;;  %v207_v44 = vld [vmem:[#allocation8 + $0x60] sm:$0xff] }
  0x65   :  { %v468_v37 = vpack.c.bf16 %v202_v36, %v201_v35  ;;  %v205_v41 = vld [vmem:[#allocation8 + $0x50] sm:$0xff]  ;;  %v206_v42 = vld [vmem:[#allocation8 + $0x58] sm:$0xff]  ;;  %v208_v45 = vld [vmem:[#allocation8 + $0x68] sm:$0xff] }
  0x66   :  { %v476_v43 = vpack.c.bf16 %v206_v42, %v205_v41  ;;  %v480_v46 = vpack.c.bf16 %v208_v45, %v207_v44  ;;  %v209_v47 = vld [vmem:[#allocation8 + $0x70] sm:$0xff]  ;;  %v210_v48 = vld [vmem:[#allocation8 + $0x78] sm:$0xff]  ;;  %v317_v1 = vld [vmem:[#allocation10] ss:$0 sm:$0xff] }
  0x67   :  { %435 = vmatpush3.bf16.msra.mxu0 %v432_v8  ;;  %463 = vmatpush3.bf16.msra.mxu1 %v460_v17  ;;  %v484_v49 = vpack.c.bf16 %v210_v48, %v209_v47  ;;  %v316_v50 = vld [vmem:[#allocation7] ss:$0 sm:$0xff] }
  0x68   :  { %437 = vmatprep.subr.bf16.mxu0 %v436_v20  ;;  %465 = vmatprep.subr.bf16.mxu1 %v464_v23 }
  0x6b   :  { %439 = vmatpush3.bf16.msra.mxu0 %v436_v20  ;;  %467 = vmatpush3.bf16.msra.mxu1 %v464_v23 }
  0x6c   :  { %441 = vmatprep.subr.bf16.mxu0 %v440_v24  ;;  %469 = vmatprep.subr.bf16.mxu1 %v468_v37 }
  0x6f   :  { %443 = vmatpush3.bf16.msra.mxu0 %v440_v24  ;;  %471 = vmatpush3.bf16.msra.mxu1 %v468_v37 }
  0x70   :  { %445 = vmatprep.subr.bf16.mxu0 %v444_v27  ;;  %473 = vmatprep.subr.bf16.mxu1 %v472_v40 }
  0x73   :  { %447 = vmatpush3.bf16.msra.mxu0 %v444_v27  ;;  %475 = vmatpush3.bf16.msra.mxu1 %v472_v40 }
  0x74   :  { %449 = vmatprep.subr.bf16.mxu0 %v448_v30  ;;  %477 = vmatprep.subr.bf16.mxu1 %v476_v43 }
  0x77   :  { %451 = vmatpush3.bf16.msra.mxu0 %v448_v30  ;;  %479 = vmatpush3.bf16.msra.mxu1 %v476_v43 }
  0x78   :  { %453 = vmatprep.subr.bf16.mxu0 %v452_v33  ;;  %481 = vmatprep.subr.bf16.mxu1 %v480_v46 }
  0x7b   :  { %455 = vmatpush3.bf16.msra.mxu0 %v452_v33  ;;  %483 = vmatpush3.bf16.msra.mxu1 %v480_v46 }
  0x7c   :  { %485 = vmatprep.subr.bf16.mxu1 %v484_v49 }
  0x7e   :  { %387 = vmatmul.mubr.f32.vlgmr.msra.gmra.mrb[0].mxu0 %v86_v34 }
  0x7f   :  { %487 = vmatpush3.bf16.msra.mxu1 %v484_v49 }
 0x151   :  { %v388_v51 = vpop.f32.mrb[0].mxu0 }
 0x152   :  { %v182_v52 = vadd.f32 %v388_v51, %v316_v50  ;;  %v176_v53 = vpop.f32.mrb[1].mxu0 }
 0x153   :  { %v177_v54 = vadd.f32 %v316_v50, %v176_v53 }
 0x154   :  { %v188_v55 = vmul.f32 0.70710677, %v182_v52  ;;  %v186_v62 = vmul.f32 0.5, %v182_v52 }
 0x155   :  { %v187_v56 = vmul.f32 0.70710677, %v177_v54  ;;  %v185_v60 = vmul.f32 0.5, %v177_v54 }
 0x156   :  { %496 = verf.f32 %v188_v55 }
 0x157   :  { %498 = verf.f32 %v187_v56 }
 0x160   :  { %v497_v57 = vpop.eup %496 }
 0x161   :  { %v499_v58 = vpop.eup %498  ;;  %v192_v59 = vadd.f32 1.0, %v497_v57 }
 0x162   :  { %v191_v61 = vadd.f32 1.0, %v499_v58 }
 0x163   :  { %v194_v0 = vmul.f32 %v192_v59, %v186_v62 }
 0x164   :  { %v193_v63 = vmul.f32 %v191_v61, %v185_v60 }
 0x166   :  { %421 = vmatprep.mubr.f32.mxu1 %v193_v63 }
 0x167   :  { %422 = vmatmul.mubr.f32.vlgmr.msra.gmra.mrb[0].mxu1 %v194_v0 }
 0x23a   :  { %v423_v2 = vpop.f32.mrb[0].mxu1 }
 0x23b   :  { %v290_v3 = vadd.f32 %v423_v2, %v317_v1  ;;  %v284_v4 = vpop.f32.mrb[1].mxu1 }
 0x23c   :  { %v285_v5 = vadd.f32 %v317_v1, %v284_v4 }
 0x23d   :  { %v294_v6 = vadd.f32 %v290_v3, %v86_v34 }
 0x23e   :  { %v293_v7 = vadd.f32 %v285_v5, %v754_v11 }
 0x23f   :  { %296 = vst [vmem:[#allocation11 + $0x8] sm:$0xff] %v294_v6 }
 0x240   :  { %295 = vst [vmem:[#allocation11] sm:$0xff] %v293_v7 }
 0x241   :  { %621 = shalt.err (!%p618_p2)
}
 0x242   :  { %s622_s9 = scalar_lea.hbm %s778_s5, 256 }
 0x243   :  { %p623_p3 = scmp.ne.s32.totalorder %s778_s5, %s622_s9  ;;  %p626_p4 = scmp.lt.u32.totalorder %s622_s9, %s778_s5 }
 0x245   :  { %p628_p5 = pnand %p626_p4, %p623_p3 }
 0x247   :  { %631 = shalt.err (!%p628_p5)
}
 0x248   :  { %308 = dma.vmem_to_hbm [thread:$0]  %s303_s3, 256, %s778_s5, [#allocation4], %s642_s30, %s642_s30, %s643_s6  }
 0x249   :  { %638 = dma.done.wait [#allocation4], 256  }
 0x24a   :  { %639 = vsyncadd [#allocation4], 4294967040 }
 0x24b   :  { %312 = vsyncpa [#allocation3], 1 }
 0x24c   :  { %313 = vsyncpa [#allocation6], 1 }
 0x24d   :  { %314 = vsyncpa [#allocation9], 1 }
 0x24e   :  { %315 = vsyncpa [#allocation4], 1 }

</bundles_post_ra>
